<compile_context>
chip_gen: v6e
topology: v6e:2x2x1
jax: 0.10.0
libtpu: 0.0.40
codegen_flags: <defaults>
</compile_context>

<pallas_src>
import functools

import jax
import jax.numpy as jnp
from jax.experimental import pallas as pl
from jax.experimental.pallas import tpu as pltpu

_LANE = 128
_VMEM_TILE_BUDGET = 24 * 1024 * 1024   # budget for double-buffered input+output tiles
_VMEM_LIMIT_BYTES = 32 * 1024 * 1024   # safe on v5e/v6e (128 MiB) and v7x (64 MiB)


def _attention_kernel(t_ref, a_ref, w1t_ref, w2t_ref, w3t_ref, b12_ref, b3_ref,
                      o_ref):
    # Ref shapes (batch dim squeezed out by BlockSpec):
    #   t_ref : (C_t, ts)        a_ref : (C_a, ts)
    #   w1t   : (C_out, C_t)     w2t   : (C_out, C_a)     w3t : (C_out, C_out)
    #   b12   : (C_out, 1)       b3    : (C_out, 1)
    #   o_ref : (C_out, ts)
    t32 = t_ref[...].astype(jnp.float32)
    a32 = a_ref[...].astype(jnp.float32)

    # 1x1x1 conv == channel mix; contraction over the tiny sublane axis, f32 accumulate.
    h = jnp.dot(w1t_ref[...], t32, preferred_element_type=jnp.float32)
    h = h + jnp.dot(w2t_ref[...], a32, preferred_element_type=jnp.float32)
    h = jnp.maximum(h + b12_ref[...], 0.0)                        # ReLU (b1+b2 folded)
    z = jnp.dot(w3t_ref[...], h, preferred_element_type=jnp.float32) + b3_ref[...]

    # Sigmoid entirely on the EUP: exp + approx reciprocal (divide stays off the VALU).
    s = pl.reciprocal(1.0 + jnp.exp(-z), approx=True)

    o_ref[...] = (s * a32).astype(o_ref.dtype)                    # gate * att_tensor


@functools.partial(jax.jit, static_argnames=("tile_s",))
def attention_forward(tensor, att_tensor, params, tile_s=65536):
    """tensor: (N, C_t, D, H, W), att_tensor: (N, C_a, D, H, W) -> (N, C_out, D, H, W)."""
    w1, b1, w2, b2, w3, b3 = params
    N, C_t, D, H, W = tensor.shape
    C_a = att_tensor.shape[1]
    C_out = w1.shape[1]
    S = D * H * W

    if C_out != C_a:
        # Same constraint as the PyTorch module: conv3d3 is declared with C_a input
        # channels but applied to a C_out-channel activation, and the final gate
        # multiplies a C_out-channel map with the C_a-channel att_tensor.
        raise ValueError("Attention requires out_channels == in_channels_att_tensor")

    # Free reshapes (no transpose): the contiguous spatial axis maps to lanes.
    t3 = tensor.reshape(N, C_t, S)
    a3 = att_tensor.reshape(N, C_a, S)

    # Transposed weights so the kernel computes wT @ x; fold b1+b2 once here.
    w1t = jnp.transpose(w1).astype(jnp.float32)        # (C_out, C_t)
    w2t = jnp.transpose(w2).astype(jnp.float32)        # (C_out, C_a)
    w3t = jnp.transpose(w3).astype(jnp.float32)        # (C_out, C_out)
    b12 = (b1 + b2).reshape(C_out, 1).astype(jnp.float32)
    b3c = b3.reshape(C_out, 1).astype(jnp.float32)

    t_isz = jnp.dtype(tensor.dtype).itemsize
    a_isz = jnp.dtype(att_tensor.dtype).itemsize
    o_isz = jnp.dtype(att_tensor.dtype).itemsize

    # --- Spatial tile selection -------------------------------------------------
    # Big tiles amortize the ~0.35us/grid-step overhead; cap by the double-buffered
    # VMEM working set (inputs + output).  Guard against tile_s < 128 (would floor
    # to 0) by clamping up to one lane-width.
    per_s_bytes = 2 * (C_t * t_isz + C_a * a_isz + C_out * o_isz)
    max_ts_vmem = max(_LANE, (_VMEM_TILE_BUDGET // per_s_bytes) // _LANE * _LANE)
    ts = min(max(int(tile_s), _LANE), S, max_ts_vmem)
    if ts < S:
        ts = max(_LANE, (ts // _LANE) * _LANE)   # block last dim: multiple of 128

    # Keep at least two grid steps when possible so both v7x TensorCores get work.
    if N * pl.cdiv(S, ts) < 2 and S >= 2 * _LANE:
        ts = max(_LANE, ((-(-S // 2)) // _LANE) * _LANE)

    grid = (N, pl.cdiv(S, ts))

    # Advisory cost estimate for XLA's scheduler.
    flops = (2 * (C_t + C_a + C_out) * C_out + 6 * C_out) * S * N
    transcendentals = 2 * C_out * S * N                      # exp + reciprocal
    bytes_accessed = (C_t * t_isz + C_a * a_isz + C_out * o_isz) * S * N
    cost = pl.CostEstimate(flops=int(flops),
                           transcendentals=int(transcendentals),
                           bytes_accessed=int(bytes_accessed))

    out3 = pl.pallas_call(
        _attention_kernel,
        out_shape=jax.ShapeDtypeStruct((N, C_out, S), att_tensor.dtype),
        grid_spec=pltpu.PrefetchScalarGridSpec(
            num_scalar_prefetch=0,
            grid=grid,
            in_specs=[
                pl.BlockSpec((None, C_t, ts), lambda n, s: (n, 0, s)),   # tensor
                pl.BlockSpec((None, C_a, ts), lambda n, s: (n, 0, s)),   # att_tensor
                pl.BlockSpec((C_out, C_t), lambda n, s: (0, 0)),         # w1^T (resident)
                pl.BlockSpec((C_out, C_a), lambda n, s: (0, 0)),         # w2^T
                pl.BlockSpec((C_out, C_out), lambda n, s: (0, 0)),       # w3^T
                pl.BlockSpec((C_out, 1), lambda n, s: (0, 0)),           # b1+b2
                pl.BlockSpec((C_out, 1), lambda n, s: (0, 0)),           # b3
            ],
            out_specs=pl.BlockSpec((None, C_out, ts), lambda n, s: (n, 0, s)),
        ),
        compiler_params=pltpu.CompilerParams(
            dimension_semantics=("parallel", "parallel"),
            vmem_limit_bytes=_VMEM_LIMIT_BYTES),
        cost_estimate=cost,
    )(t3, a3, w1t, w2t, w3t, b12, b3c)

    # (N, C_out, S) -> NCDHW, again a free reshape.
    return out3.reshape(N, C_out, D, H, W)


def init_params(key, in_channels_tensor, in_channels_att_tensor, out_channels,
                dtype=jnp.float32):
    """Deterministic synthetic weights matching the Conv3d(1x1x1) parameter shapes.

    PyTorch Conv3d weight is (C_out, C_in, 1, 1, 1); stored here as (C_in, C_out)
    (the wrapper transposes once for the kernel's wT @ x orientation).
    """
    k1, k2, k3, k4, k5, k6 = jax.random.split(key, 6)
    w1 = jax.random.normal(k1, (in_channels_tensor, out_channels), dtype) * 0.1
    b1 = jax.random.normal(k2, (1, out_channels), dtype) * 0.1
    w2 = jax.random.normal(k3, (in_channels_att_tensor, out_channels), dtype) * 0.1
    b2 = jax.random.normal(k4, (1, out_channels), dtype) * 0.1
    # conv3d3 is declared with in_channels_att_tensor input channels; the module only
    # runs when out_channels == in_channels_att_tensor (checked in wrapper).
    w3 = jax.random.normal(k5, (in_channels_att_tensor, out_channels), dtype) * 0.1
    b3 = jax.random.normal(k6, (1, out_channels), dtype) * 0.1
    return (w1, b1, w2, b2, w3, b3)


def _reference(tensor, att_tensor, params):
    w1, b1, w2, b2, w3, b3 = params
    t2 = jnp.transpose(tensor, (0, 2, 3, 4, 1))
    a2 = jnp.transpose(att_tensor, (0, 2, 3, 4, 1))
    g1 = t2 @ w1 + b1[0]
    x1 = a2 @ w2 + b2[0]
    h = jnp.maximum(g1 + x1, 0.0)
    s = jax.nn.sigmoid(h @ w3 + b3[0])
    out = s * a2
    return jnp.transpose(out, (0, 4, 1, 2, 3))


if __name__ == "__main__":
    # Small shapes: module constraint -> out_channels == C_att.
    N, C_t, C_a, C_out = 2, 8, 4, 4
    D, H, W = 4, 8, 8            # S = D*H*W = 256 (lane-dense, 2 x 128)

    key = jax.random.PRNGKey(0)
    kt, ka, kp = jax.random.split(key, 3)
    tensor = jax.random.normal(kt, (N, C_t, D, H, W), jnp.float32)
    att_tensor = jax.random.normal(ka, (N, C_a, D, H, W), jnp.float32)
    params = init_params(kp, C_t, C_a, C_out)

    out = attention_forward(tensor, att_tensor, params)
    out = jax.block_until_ready(out)
    ref = _reference(tensor, att_tensor, params)
    assert out.shape == (N, C_out, D, H, W), out.shape
    # Approx-reciprocal sigmoid (EUP) -> compare with a correspondingly loose tolerance.
    assert jnp.allclose(out, ref, atol=5e-3, rtol=5e-3), "mismatch vs reference (test 1)"

    # Second config: exercises the multi-tile grid and the tile_s < 128 guard.
    D2, H2, W2 = 3, 8, 16        # S = 384 -> 3 spatial tiles of 128
    kt2, ka2 = jax.random.split(key, 2)
    tensor2 = jax.random.normal(kt2, (N, C_t, D2, H2, W2), jnp.float32)
    att_tensor2 = jax.random.normal(ka2, (N, C_a, D2, H2, W2), jnp.float32)
    out2 = jax.block_until_ready(attention_forward(tensor2, att_tensor2, params,
                                                   tile_s=100))
    ref2 = _reference(tensor2, att_tensor2, params)
    assert out2.shape == (N, C_out, D2, H2, W2), out2.shape
    assert jnp.allclose(out2, ref2, atol=5e-3, rtol=5e-3), "mismatch vs reference (test 2)"

    print("KERNEL_OK")
</pallas_src>

<mosaic_0001>
module attributes {stable_mosaic.version = 11 : i64} {
  func.func @_attention_kernel(%arg0: i32, %arg1: i32, %arg2: memref<1x8x256xf32, #tpu.memory_space<vmem>>, %arg3: memref<1x4x256xf32, #tpu.memory_space<vmem>>, %arg4: memref<4x8xf32, #tpu.memory_space<vmem>>, %arg5: memref<4x4xf32, #tpu.memory_space<vmem>>, %arg6: memref<4x4xf32, #tpu.memory_space<vmem>>, %arg7: memref<4x1xf32, #tpu.memory_space<vmem>>, %arg8: memref<4x1xf32, #tpu.memory_space<vmem>>, %arg9: memref<1x4x256xf32, #tpu.memory_space<vmem>>) attributes {dimension_semantics = [#tpu.dimension_semantics<parallel>, #tpu.dimension_semantics<parallel>], iteration_bounds = array<i64: 2, 1>, scalar_prefetch = 0 : i64, scratch_operands = 0 : i64, tpu.core_type = #tpu.core_type<tc>, window_params = [{transform_indices = @transform_0, window_bounds = array<i64: 1, 8, 256>}, {transform_indices = @transform_1, window_bounds = array<i64: 1, 4, 256>}, {pipeline_mode = #tpu.pipeline_mode<synchronous>, transform_indices = @transform_2, window_bounds = array<i64: 4, 8>}, {pipeline_mode = #tpu.pipeline_mode<synchronous>, transform_indices = @transform_3, window_bounds = array<i64: 4, 4>}, {pipeline_mode = #tpu.pipeline_mode<synchronous>, transform_indices = @transform_4, window_bounds = array<i64: 4, 4>}, {pipeline_mode = #tpu.pipeline_mode<synchronous>, transform_indices = @transform_5, window_bounds = array<i64: 4, 1>}, {pipeline_mode = #tpu.pipeline_mode<synchronous>, transform_indices = @transform_6, window_bounds = array<i64: 4, 1>}, {transform_indices = @transform_7, window_bounds = array<i64: 1, 4, 256>}]} {
    %c0 = arith.constant 0 : index
    %c0_0 = arith.constant 0 : index
    %c0_1 = arith.constant 0 : index
    %0 = vector.load %arg2[%c0, %c0_0, %c0_1] : memref<1x8x256xf32, #tpu.memory_space<vmem>>, vector<1x8x256xf32>
    %1 = vector.shape_cast %0 : vector<1x8x256xf32> to vector<8x256xf32>
    %c0_2 = arith.constant 0 : index
    %c0_3 = arith.constant 0 : index
    %c0_4 = arith.constant 0 : index
    %2 = vector.load %arg3[%c0_2, %c0_3, %c0_4] : memref<1x4x256xf32, #tpu.memory_space<vmem>>, vector<1x4x256xf32>
    %3 = vector.shape_cast %2 : vector<1x4x256xf32> to vector<4x256xf32>
    %c0_5 = arith.constant 0 : index
    %c0_6 = arith.constant 0 : index
    %4 = vector.load %arg4[%c0_5, %c0_6] : memref<4x8xf32, #tpu.memory_space<vmem>>, vector<4x8xf32>
    %cst = arith.constant dense<0.000000e+00> : vector<4x256xf32>
    %5 = tpu.matmul %4, %1, %cst {dimension_numbers = #tpu.dot_dimension_numbers<[1], [0], [0], [1], [0, 0, 1, 1], [], []>} : vector<4x8xf32>, vector<8x256xf32>, vector<4x256xf32> -> vector<4x256xf32>
    %c0_7 = arith.constant 0 : index
    %c0_8 = arith.constant 0 : index
    %6 = vector.load %arg5[%c0_7, %c0_8] : memref<4x4xf32, #tpu.memory_space<vmem>>, vector<4x4xf32>
    %cst_9 = arith.constant dense<0.000000e+00> : vector<4x256xf32>
    %7 = tpu.matmul %6, %3, %cst_9 {dimension_numbers = #tpu.dot_dimension_numbers<[1], [0], [0], [1], [0, 0, 1, 1], [], []>} : vector<4x4xf32>, vector<4x256xf32>, vector<4x256xf32> -> vector<4x256xf32>
    %8 = arith.addf %5, %7 : vector<4x256xf32>
    %c0_10 = arith.constant 0 : index
    %c0_11 = arith.constant 0 : index
    %9 = vector.load %arg7[%c0_10, %c0_11] : memref<4x1xf32, #tpu.memory_space<vmem>>, vector<4x1xf32>
    %10 = vector.broadcast %9 : vector<4x1xf32> to vector<4x256xf32>
    %11 = arith.addf %8, %10 : vector<4x256xf32>
    %cst_12 = arith.constant 0.000000e+00 : f32
    %12 = vector.broadcast %cst_12 : f32 to vector<4x256xf32>
    %13 = arith.maximumf %11, %12 : vector<4x256xf32>
    %c0_13 = arith.constant 0 : index
    %c0_14 = arith.constant 0 : index
    %14 = vector.load %arg6[%c0_13, %c0_14] : memref<4x4xf32, #tpu.memory_space<vmem>>, vector<4x4xf32>
    %cst_15 = arith.constant dense<0.000000e+00> : vector<4x256xf32>
    %15 = tpu.matmul %14, %13, %cst_15 {dimension_numbers = #tpu.dot_dimension_numbers<[1], [0], [0], [1], [0, 0, 1, 1], [], []>} : vector<4x4xf32>, vector<4x256xf32>, vector<4x256xf32> -> vector<4x256xf32>
    %c0_16 = arith.constant 0 : index
    %c0_17 = arith.constant 0 : index
    %16 = vector.load %arg8[%c0_16, %c0_17] : memref<4x1xf32, #tpu.memory_space<vmem>>, vector<4x1xf32>
    %17 = vector.broadcast %16 : vector<4x1xf32> to vector<4x256xf32>
    %18 = arith.addf %15, %17 : vector<4x256xf32>
    %cst_18 = arith.constant 0.000000e+00 : f32
    %19 = vector.broadcast %cst_18 : f32 to vector<4x256xf32>
    %20 = arith.subf %19, %18 : vector<4x256xf32>
    %21 = math.exp %20 : vector<4x256xf32>
    %cst_19 = arith.constant 1.000000e+00 : f32
    %22 = vector.broadcast %cst_19 : f32 to vector<4x256xf32>
    %23 = arith.addf %22, %21 : vector<4x256xf32>
    %24 = tpu.reciprocal %23 {approx = true} : vector<4x256xf32> -> vector<4x256xf32>
    %25 = arith.mulf %24, %3 : vector<4x256xf32>
    %c0_20 = arith.constant 0 : index
    %c0_21 = arith.constant 0 : index
    %c0_22 = arith.constant 0 : index
    %26 = vector.load %arg9[%c0_20, %c0_21, %c0_22] : memref<1x4x256xf32, #tpu.memory_space<vmem>>, vector<1x4x256xf32>
    %27 = vector.shape_cast %26 : vector<1x4x256xf32> to vector<4x256xf32>
    %28 = vector.shape_cast %25 : vector<4x256xf32> to vector<1x4x256xf32>
    tpu.vector_store %arg9[%c0_20, %c0_21, %c0_22], %28 {strides = array<i32>} : memref<1x4x256xf32, #tpu.memory_space<vmem>>, vector<1x4x256xf32>,
    return
  }
  func.func @transform_0(%arg0: i32, %arg1: i32) -> (i32, i32, i32) {
    %c0_i32 = arith.constant 0 : i32
    %c0_i32_0 = arith.constant 0 : i32
    return %arg0, %c0_i32, %arg1 : i32, i32, i32
  }
  func.func @transform_1(%arg0: i32, %arg1: i32) -> (i32, i32, i32) {
    %c0_i32 = arith.constant 0 : i32
    %c0_i32_0 = arith.constant 0 : i32
    return %arg0, %c0_i32, %arg1 : i32, i32, i32
  }
  func.func @transform_2(%arg0: i32, %arg1: i32) -> (i32, i32) {
    %c0_i32 = arith.constant 0 : i32
    %c0_i32_0 = arith.constant 0 : i32
    %c0_i32_1 = arith.constant 0 : i32
    return %c0_i32, %c0_i32_0 : i32, i32
  }
  func.func @transform_3(%arg0: i32, %arg1: i32) -> (i32, i32) {
    %c0_i32 = arith.constant 0 : i32
    %c0_i32_0 = arith.constant 0 : i32
    %c0_i32_1 = arith.constant 0 : i32
    return %c0_i32, %c0_i32_0 : i32, i32
  }
  func.func @transform_4(%arg0: i32, %arg1: i32) -> (i32, i32) {
    %c0_i32 = arith.constant 0 : i32
    %c0_i32_0 = arith.constant 0 : i32
    %c0_i32_1 = arith.constant 0 : i32
    return %c0_i32, %c0_i32_0 : i32, i32
  }
  func.func @transform_5(%arg0: i32, %arg1: i32) -> (i32, i32) {
    %c0_i32 = arith.constant 0 : i32
    %c0_i32_0 = arith.constant 0 : i32
    %c0_i32_1 = arith.constant 0 : i32
    return %c0_i32, %c0_i32_0 : i32, i32
  }
  func.func @transform_6(%arg0: i32, %arg1: i32) -> (i32, i32) {
    %c0_i32 = arith.constant 0 : i32
    %c0_i32_0 = arith.constant 0 : i32
    %c0_i32_1 = arith.constant 0 : i32
    return %c0_i32, %c0_i32_0 : i32, i32
  }
  func.func @transform_7(%arg0: i32, %arg1: i32) -> (i32, i32, i32) {
    %c0_i32 = arith.constant 0 : i32
    %c0_i32_0 = arith.constant 0 : i32
    return %arg0, %c0_i32, %arg1 : i32, i32, i32
  }
}

</mosaic_0001>

<bundles_post_ra>
// kernel: attention_forward.1
= control target key start
LH: loop header
LB: loop body
LE: loop exit
PB: predicated region body
PF: predicated region fallthrough
CT: control target
= control target key end

     0   :  { %s861_s24 = smov 0   ;;  %s863_s25 = smov 0   ;;  %s926_s0 = inlined_call_operand.vmem [shape: f32[2,8,256], index: 0, kind: input, shape index: {}]   ;;  %s927_s1 = inlined_call_operand.vmem [shape: f32[2,4,256], index: 1, kind: input, shape index: {}]   ;;  %s928_s2 = inlined_call_operand.vmem [shape: f32[4,8], index: 2, kind: input, shape index: {}]   ;;  %s929_s3 = inlined_call_operand.vmem [shape: f32[4,4], index: 3, kind: input, shape index: {}]   ;;  %s930_s4 = inlined_call_operand.vmem [shape: f32[4,4], index: 4, kind: input, shape index: {}]   ;;  %s931_s5 = inlined_call_operand.vmem [shape: f32[4,1], index: 5, kind: input, shape index: {}]   ;;  %s932_s6 = inlined_call_operand.vmem [shape: f32[4,1], index: 6, kind: input, shape index: {}]   ;;  %s933_s7 = inlined_call_operand.vmem [shape: f32[2,4,256], index: 7, kind: output, shape index: {}]  }
   0x1   :  { %s865_s26 = smov 0  }
   0x2 LB: > { %s29_s27 = sadd.s32 1, %s813_s25  ;;  %p740_p0 = scmp.ge.s32.totalorder %s817_s26, 1  ;;  %s817_s26 = sphi %s865_s26, %s17_s26   ;;  %s813_s25 = sphi %s863_s25, %s935_s25   ;;  %s809_s24 = sphi %s861_s24, %s934_s24  }
   0x3   : > { %p31_p1 = scmp.ge.s32.totalorder %s29_s27, 2  ;;  %p275_p2 = scmp.lt.s32.totalorder %s817_s26, 3 }
   0x5   : > { %s937_s27 = smov (%p31_p1, %s29_s27), 0  ;;  %p276_p3 = pnand %p740_p0, %p275_p2 }
   0x6   : > { %p325_p4 = scmp.lt.s32.totalorder (!%p276_p3), %s809_s24, 1 }
   0x7   : > { %279 = sbr.rel (%p276_p3) target bundleno = 460 (0x1cc), region = 48 }
   0xc   : > { %v819_v0 = vmov 0.0   ;;  %v516_v1 = vld [vmem:[%s931_s5] sm:$0xf]  ;;  %s939_s24 = smov (!%p325_p4, %s809_s24), 1  ;;  %v820_v2 = vmov 0   ;;  %vm365_vm0 = vcmask 1043456  }
   0xd   : > { %509 = vmatprep.mubr.f32.mxu1 %v819_v0  ;;  %434 = vmatprep.mubr.f32.mxu0 %v819_v0  ;;  %s756_s30 = sshll.u32 %s939_s24, 4  ;;  %s757_s8 = sshll.u32 %s939_s24, 3  ;;  %v527_v3 = vld [vmem:[%s932_s6] sm:$0xf]  ;;  %vm441_vm1 = vcmask 64512   ;;  %vm361_vm2 = vcmask 31744  }
   0xe   : > { %785 = vset.pattern.permute.xlu0 %v820_v2  ;;  %s332_s13 = scalar_lea.vmem %s926_s0, %s756_s30  ;;  %s342_s16 = scalar_lea.vmem %s927_s1, %s757_s8  ;;  %v357_v4 = vld [vmem:[%s928_s2] sm:$0xf] }
   0xf   : > { %519 = vperm.xlu0 %785, %v516_v1   ;;  %v355_v5 = vld [vmem:[%s332_s13 + $0x8] sm:$0xff]  ;;  %v354_v6 = vld [vmem:[%s332_s13] sm:$0xff]  ;;  %s352_s29 = scalar_lea.vmem %s933_s7, %s757_s8 }
  0x10   : > { %v356_v7 = vld [vmem:[%s342_s16] sm:$0xff]  ;;  %475 = vmatprep.subr.mxu1 %v355_v5 }
  0x11   : > { %v360_v8 = vcombine.high %v356_v7, %v356_v7  ;;  %476 = vmatpush1.msra.mxu1 %v354_v6  ;;  %v358_v9 = vld [vmem:[%s929_s3] sm:$0xf] }
  0x12   : > { %750 = vmatmul.mubr.msk.f32.vlgmr.msra.gmra.mxu1 %vm441_vm1, %v357_v4  ;;  %v526_v21 = vld [vmem:[%s930_s4] sm:$0xf] }
  0x13   : > { %530 = vperm.xlu0 %785, %v527_v3   ;;  %747 = vmatprep.subr.msk.mxu0 %vm365_vm0, %v360_v8 }
  0x14   : > { %748 = vmatpush1.msk.msra.mxu0 %vm365_vm0, %v356_v7 }
  0x15   : > { %749 = vmatmul.mubr.msk.f32.vlgmr.msra.gmra.mxu0 %vm361_vm2, %v358_v9 }
  0x16   : > { %606 = vmatprep.mubr.f32.mxu0 %v819_v0 }
  0x8a   : > { %v520_v15 = vpop.permute.xlu0 %519 }
  0x8e   : > { %v531_v22 = vpop.permute.xlu0 %530 }
  0xd2   : > { %v511_v10 = vpop.f32.mrf.mxu1 }
  0xd4   : > { %v513_v13 = vpop.f32.mrf.mxu1 }
  0xd5   : > { %v436_v11 = vpop.f32.mrf.mxu0 }
  0xd6   : > { %v512_v12 = vadd.f32 %v511_v10, %v436_v11 }
  0xd7   : > { %v438_v14 = vpop.f32.mrf.mxu0 }
  0xd8   : > { %v514_v16 = vadd.f32 %v513_v13, %v438_v14  ;;  %v522_v17 = vadd.f32 %v520_v15, %v512_v12 }
  0xda   : > { %v523_v18 = vadd.f32 %v520_v15, %v514_v16  ;;  %v524_v20 = vmax.f32 %v522_v17, 0.0 }
  0xdc   : > { %v525_v19 = vmax.f32 %v523_v18, 0.0 }
  0xde   : > { %751 = vmatprep.subr.msk.mxu0 %vm365_vm0, %v525_v19 }
  0xdf   : > { %752 = vmatpush1.msk.msra.mxu0 %vm365_vm0, %v524_v20 }
  0xe0   : > { %753 = vmatmul.mubr.msk.f32.vlgmr.msra.gmra.mxu0 %vm361_vm2, %v526_v21 }
 0x1a0   : > { %v608_v23 = vpop.f32.mrf.mxu0 }
 0x1a1   : > { %v609_v24 = vadd.f32 %v608_v23, %v531_v22 }
 0x1a2   : > { %v610_v25 = vpop.f32.mrf.mxu0 }
 0x1a3   : > { %v613_v26 = vsub.f32 0.0, %v609_v24  ;;  %v611_v27 = vadd.f32 %v610_v25, %v531_v22 }
 0x1a5   : > { %v615_v28 = vmul.f32 1.442695, %v613_v26  ;;  %v614_v29 = vsub.f32 0.0, %v611_v27 }
 0x1a7   : > { %787 = vpow2.f32 %v615_v28  ;;  %v617_v30 = vmul.f32 1.442695, %v614_v29 }
 0x1a9   : > { %789 = vpow2.f32 %v617_v30 }
 0x1b4   : > { %v788_v31 = vpop.eup %787 }
 0x1b5   : > { %v619_v32 = vadd.f32 1.0, %v788_v31 }
 0x1b6   : > { %v790_v33 = vpop.eup %789 }
 0x1b7   : > { %791 = vrcp.f32 %v619_v32  ;;  %v620_v34 = vadd.f32 1.0, %v790_v33 }
 0x1b9   : > { %793 = vrcp.f32 %v620_v34 }
 0x1c4   : > { %v792_v35 = vpop.eup %791 }
 0x1c5   : > { %v624_v37 = vmul.f32 %v792_v35, %v356_v7 }
 0x1c6   : > { %v794_v36 = vpop.eup %793 }
 0x1c7   : > { %v625_v38 = vmul.f32 %v794_v36, %v360_v8 }
 0x1c9   : > { %v628_v39 = vcombine.low %v624_v37, %v625_v38 }
 0x1cb   : > { %630 = vst [vmem:[%s352_s29] sm:$0xff] %v628_v39 }
 0x1cc PF: > { %s17_s26 = sadd.s32 1, %s817_s26   ;;  %s934_s24 = smov %s813_s25 }
 0x1cd   : > { %p14_p5 = scmp.ge.s32.totalorder %s17_s26, 4   ;;  %s935_s25 = smov %s937_s27 }
 0x1cf   :  { %16 = sbr.rel (!%p14_p5) target bundleno = 2 (0x2), region = 81 }

</bundles_post_ra>
